<compile_context>
chip_gen: v5e
topology: v5e:2x2
jax: 0.10.0
libtpu: 0.0.40
codegen_flags: <defaults>
</compile_context>

<pallas_src>
import math
import jax
import jax.numpy as jnp
from jax.experimental import pallas as pl
from jax.experimental.pallas import tpu as pltpu


def _round_up(v, m):
    return ((v + m - 1) // m) * m


def _pick_tile_m(M, target=2048):
    """Largest multiple-of-8 divisor of M that is <= target and gives >= 2 grid steps.

    Returns (tile_m, Mp).  Falls back to a single full-extent tile for tiny M,
    or to row padding when M has no friendly divisor.
    """
    hi = min(M // 2, target)
    start = hi - (hi % 8)
    for t in range(start, 7, -8):
        if M % t == 0:
            return t, M                       # exact tiling, >= 2 steps
    if M <= target:
        return M, M                           # one full-extent tile (legal block)
    return target, _round_up(M, target)       # pad rows as a last resort


def _patch_embed_kernel(x_ref, w_ref, b_ref, o_ref):
    # x_ref: (tile_m, K)   w_ref: (K, E)   b_ref: (1, E)   o_ref: (tile_m, E)
    # Native-dtype MXU operands, f32 accumulation.
    acc = jnp.dot(x_ref[...], w_ref[...], preferred_element_type=jnp.float32)
    acc = acc + b_ref[...].astype(jnp.float32)
    o_ref[...] = acc.astype(o_ref.dtype)


def patch_embed_pallas(x, w_conv, b_conv, *, patch_size=4, tile_m=None,
                       compute_dtype=None):
    """PatchEmbed forward.

    x:      (B, C, H, W)
    w_conv: (E, C, p, p)  Conv2d weight (kernel == stride == p)
    b_conv: (E,)          Conv2d bias
    returns (B, (H//p)*(W//p), E)   ==  proj(x).flatten(2).transpose(1, 2)
    """
    if isinstance(patch_size, (tuple, list)):
        ph, pw = patch_size
    else:
        ph = pw = patch_size

    B, C, H, W = x.shape
    assert H % ph == 0 and W % pw == 0, "image size must be divisible by patch size"
    Ho, Wo = H // ph, W // pw
    E = w_conv.shape[0]
    K = C * ph * pw
    M = B * Ho * Wo

    # --- im2col for non-overlapping patches (pure layout, done by XLA) ------
    # (B, C, Ho, ph, Wo, pw) -> (B, Ho, Wo, C, ph, pw) -> (M, K)
    # The (C, ph, pw) flattening order matches the Conv2d weight layout.
    xp = x.reshape(B, C, Ho, ph, Wo, pw).transpose(0, 2, 4, 1, 3, 5).reshape(M, K)
    w2 = w_conv.reshape(E, K).T            # (K, E): y = patches @ w2 + b
    b2 = b_conv.reshape(1, E)

    if compute_dtype is not None:          # e.g. jnp.bfloat16 to halve HBM traffic
        xp = xp.astype(compute_dtype)
        w2 = w2.astype(compute_dtype)

    # --- choose token tiling (no K/E padding; avoid M padding when possible) -
    if tile_m is None:
        tile_m, Mp = _pick_tile_m(M)
    else:
        tile_m = max(8, int(tile_m))
        Mp = _round_up(M, tile_m)
    if Mp != M:
        xp = jnp.pad(xp, ((0, Mp - M), (0, 0)))

    grid = (Mp // tile_m,)
    out_dtype = x.dtype

    # --- VMEM budget: real footprint (with (8,128) in-VMEM padding) * 1.5 ----
    x_isz = jnp.dtype(xp.dtype).itemsize
    w_isz = jnp.dtype(w2.dtype).itemsize
    b_isz = jnp.dtype(b2.dtype).itemsize
    o_isz = jnp.dtype(out_dtype).itemsize
    Kl = _round_up(K, 128)                 # lane padding inside VMEM
    El = _round_up(E, 128)
    Ks = _round_up(K, 8)                   # sublane padding for the weight
    est = (2 * tile_m * Kl * x_isz         # x tiles (double-buffered)
           + 2 * tile_m * El * o_isz       # out tiles (double-buffered)
           + 2 * Ks * El * w_isz           # resident weight (default 2 bufs, tiny)
           + 2 * 8 * El * b_isz)           # bias row
    vmem_limit = int(min(max(int(1.5 * est) + (1 << 20), 4 << 20), 60 << 20))

    out = pl.pallas_call(
        _patch_embed_kernel,
        out_shape=jax.ShapeDtypeStruct((Mp, E), out_dtype),
        grid_spec=pltpu.PrefetchScalarGridSpec(
            num_scalar_prefetch=0,
            grid=grid,
            in_specs=[
                pl.BlockSpec((tile_m, K), lambda i: (i, 0)),   # token tile
                pl.BlockSpec((K, E), lambda i: (0, 0)),        # weight (resident)
                pl.BlockSpec((1, E), lambda i: (0, 0)),        # bias   (resident)
            ],
            out_specs=pl.BlockSpec((tile_m, E), lambda i: (i, 0)),
        ),
        compiler_params=pltpu.CompilerParams(
            dimension_semantics=("parallel",),
            vmem_limit_bytes=vmem_limit,
        ),
    )(xp, w2, b2)

    if Mp != M:
        out = out[:M]
    return out.reshape(B, Ho * Wo, E)


def init_patch_embed_params(key, in_chans, embed_dim, patch_size, dtype=jnp.float32):
    """Deterministic init mirroring nn.Conv2d default (kaiming-uniform-ish)."""
    kw, kb = jax.random.split(key)
    fan_in = in_chans * patch_size * patch_size
    lim = 1.0 / math.sqrt(fan_in)
    w = jax.random.uniform(kw, (embed_dim, in_chans, patch_size, patch_size),
                           dtype, -lim, lim)
    b = jax.random.uniform(kb, (embed_dim,), dtype, -lim, lim)
    return w, b


if __name__ == "__main__":
    # Small shapes consistent with PatchEmbed: x is (B, C, H, W).
    B, C, H, W = 2, 3, 16, 16
    patch = 4
    embed_dim = 96          # Swin default; stored directly (masked vst), no pad/slice

    key = jax.random.PRNGKey(0)
    kx, kp = jax.random.split(key)
    x = jax.random.normal(kx, (B, C, H, W), jnp.float32)
    w_conv, b_conv = init_patch_embed_params(kp, C, embed_dim, patch)

    y = patch_embed_pallas(x, w_conv, b_conv, patch_size=patch)
    y = jax.block_until_ready(y)

    # Reference: the actual strided conv, then flatten(2).transpose(1, 2).
    y_conv = jax.lax.conv_general_dilated(
        x, w_conv, window_strides=(patch, patch), padding="VALID",
        dimension_numbers=("NCHW", "OIHW", "NCHW"),
        precision=jax.lax.Precision.HIGHEST)
    y_conv = y_conv + b_conv.reshape(1, embed_dim, 1, 1)
    y_ref = y_conv.reshape(B, embed_dim, -1).transpose(0, 2, 1)

    assert y.shape == (B, (H // patch) * (W // patch), embed_dim), "bad output shape"
    assert jnp.allclose(y, y_ref, atol=1e-4, rtol=1e-4), "mismatch vs conv reference"

    print("KERNEL_OK")
</pallas_src>

<mosaic_0001>
module attributes {stable_mosaic.version = 11 : i64} {
  func.func @_patch_embed_kernel(%arg0: i32, %arg1: memref<16x48xf32, #tpu.memory_space<vmem>>, %arg2: memref<48x96xf32, #tpu.memory_space<vmem>>, %arg3: memref<1x96xf32, #tpu.memory_space<vmem>>, %arg4: memref<16x96xf32, #tpu.memory_space<vmem>>) attributes {dimension_semantics = [#tpu.dimension_semantics<parallel>], iteration_bounds = array<i64: 2>, scalar_prefetch = 0 : i64, scratch_operands = 0 : i64, tpu.core_type = #tpu.core_type<tc>, window_params = [{transform_indices = @transform_0, window_bounds = array<i64: 16, 48>}, {pipeline_mode = #tpu.pipeline_mode<synchronous>, transform_indices = @transform_1, window_bounds = array<i64: 48, 96>}, {pipeline_mode = #tpu.pipeline_mode<synchronous>, transform_indices = @transform_2, window_bounds = array<i64: 1, 96>}, {transform_indices = @transform_3, window_bounds = array<i64: 16, 96>}]} {
    %c0 = arith.constant 0 : index
    %c0_0 = arith.constant 0 : index
    %0 = vector.load %arg1[%c0, %c0_0] : memref<16x48xf32, #tpu.memory_space<vmem>>, vector<16x48xf32>
    %c0_1 = arith.constant 0 : index
    %c0_2 = arith.constant 0 : index
    %1 = vector.load %arg2[%c0_1, %c0_2] : memref<48x96xf32, #tpu.memory_space<vmem>>, vector<48x96xf32>
    %cst = arith.constant dense<0.000000e+00> : vector<16x96xf32>
    %2 = tpu.matmul %0, %1, %cst {dimension_numbers = #tpu.dot_dimension_numbers<[1], [0], [0], [1], [0, 0, 1, 1], [], []>} : vector<16x48xf32>, vector<48x96xf32>, vector<16x96xf32> -> vector<16x96xf32>
    %c0_3 = arith.constant 0 : index
    %c0_4 = arith.constant 0 : index
    %3 = vector.load %arg3[%c0_3, %c0_4] : memref<1x96xf32, #tpu.memory_space<vmem>>, vector<1x96xf32>
    %4 = vector.broadcast %3 : vector<1x96xf32> to vector<16x96xf32>
    %5 = arith.addf %2, %4 : vector<16x96xf32>
    %c0_5 = arith.constant 0 : index
    %c0_6 = arith.constant 0 : index
    %6 = vector.load %arg4[%c0_5, %c0_6] : memref<16x96xf32, #tpu.memory_space<vmem>>, vector<16x96xf32>
    tpu.vector_store %arg4[%c0_5, %c0_6], %5 {strides = array<i32>} : memref<16x96xf32, #tpu.memory_space<vmem>>, vector<16x96xf32>,
    return
  }
  func.func @transform_0(%arg0: i32) -> (i32, i32) {
    %c0_i32 = arith.constant 0 : i32
    %c0_i32_0 = arith.constant 0 : i32
    return %arg0, %c0_i32 : i32, i32
  }
  func.func @transform_1(%arg0: i32) -> (i32, i32) {
    %c0_i32 = arith.constant 0 : i32
    %c0_i32_0 = arith.constant 0 : i32
    %c0_i32_1 = arith.constant 0 : i32
    return %c0_i32, %c0_i32_0 : i32, i32
  }
  func.func @transform_2(%arg0: i32) -> (i32, i32) {
    %c0_i32 = arith.constant 0 : i32
    %c0_i32_0 = arith.constant 0 : i32
    %c0_i32_1 = arith.constant 0 : i32
    return %c0_i32, %c0_i32_0 : i32, i32
  }
  func.func @transform_3(%arg0: i32) -> (i32, i32) {
    %c0_i32 = arith.constant 0 : i32
    %c0_i32_0 = arith.constant 0 : i32
    return %arg0, %c0_i32 : i32, i32
  }
}

</mosaic_0001>

<bundles_post_ra>
// kernel: tpu_custom_call.1
= control target key start
LH: loop header
LB: loop body
LE: loop exit
PB: predicated region body
PF: predicated region fallthrough
CT: control target
= control target key end

     0   :  { %8 = vsyncpa [#allocation3], 0  ;;  %s750_s0 = inlined_call_operand.hbm [shape: f32[32,48], index: 0, kind: input, shape index: {}]   ;;  %s751_s1 = inlined_call_operand.hbm [shape: f32[48,96], index: 1, kind: input, shape index: {}]   ;;  %s752_s2 = inlined_call_operand.vmem [shape: f32[1,96], index: 2, kind: input, shape index: {}]   ;;  %s753_s3 = inlined_call_operand.hbm [shape: f32[32,96], index: 3, kind: output, shape index: {}]  }
   0x1   :  { %10 = vsyncpa [#allocation3 + $0x1], 0 }
   0x2   :  { %11 = vsyncpa [#allocation6], 0 }
   0x3   :  { %12 = vsyncpa [#allocation4], 0 }
   0x4   :  { %14 = vsyncpa [#allocation4 + $0x1], 0  ;;  %s599_s12 = smov 0   ;;  %s601_s13 = smov 0  }
   0x5   :  { %s603_s14 = smov 0   ;;  %s605_s15 = smov 0  }
   0x6 LB: > { %s620_s16 = sadd.s32 4294967295, %s572_s15   ;;  %s354_s17 = sadd.s32 4294967294, %s572_s15   ;;  %s572_s15 = sphi %s605_s15, %s763_s15   ;;  %s568_s14 = sphi %s603_s14, %s762_s14   ;;  %s564_s13 = sphi %s601_s13, %s761_s13   ;;  %s560_s12 = sphi %s599_s12, %s760_s12  }
   0x7   : > { %p40_p0 = scmp.ne.s32.totalorder %s564_s13, %s560_s12  ;;  %p41_p1 = scmp.eq.s32.totalorder %s620_s16, 0 }
   0x8   : > { %p106_p2 = scmp.eq.s32.totalorder %s620_s16, 1  ;;  %p112_p3 = scmp.eq.s32.totalorder %s354_s17, 1 }
   0x9   : > { %p629_p4 = por %p41_p1, %p40_p0  ;;  %p355_p5 = scmp.ge.s32.totalorder %s572_s15, 1 }
   0xa   : > { %p634_p6 = por %p112_p3, %p40_p0  ;;  %p119_p7 = scmp.lt.s32.totalorder %s572_s15, 3 }
   0xb   : > { %s130_s22 = sshll.u32 %s751_s1, 4  ;;  %s574_s24 = smov [#allocation5]   ;;  %s131_s22 = int_to_ptr.hbm [resolvable:$true] %s130_s22 }
   0xc   : > { %p642_p8 = pnand %p355_p5, %p119_p7  ;;  %s132_s25 = sshll.u32 %s574_s24, 4  ;;  %s133_s25 = int_to_ptr.vmem [resolvable:$true] %s132_s25 }
   0xd   : > { %s652_s26 = sadd.s32 1, %s572_s15   ;;  %s575_s27 = smov 128  }
   0xe   : > { %p388_p9 = pneg %p642_p8  ;;  %s576_s28 = smov 8  }
   0xf   : > { %s24_s29 = ssub.s32 %s572_s15, %s652_s26  ;;  %s27_s30 = sadd.s32 1, %s568_s14 }
  0x10   : > { %p389_p10 = pnand %p388_p9, %p41_p1  ;;  %p25_p12 = scmp.eq.s32.totalorder %s24_s29, 0 }
  0x11   : > { %p34_p13 = scmp.ne.s32.totalorder %s568_s14, %s564_s13  ;;  %p35_p0 = scmp.eq.s32.totalorder %s572_s15, 0 }
  0x12   : > { %391 = dma.hbm_to_vmem [thread:$0]  (!%p389_p10), %s131_s22, 768, %s133_s25, [#allocation6], %s575_s27, %s575_s27, %s576_s28  }
  0x13   : > { %s664_s4 = scalar_select %p25_p12, %s568_s14, %s27_s30  }
  0x14   : > { %p668_p3 = por %p106_p2, %p34_p13  ;;  %p401_p5 = scmp.lt.s32.totalorder %s572_s15, 2 }
  0x15   : > { %s149_s6 = sand.u32 1, %s568_s14   ;;  %s372_s7 = sshll.u32 %s572_s15, 4 }
  0x16   : > { %p36_p7 = por %p35_p0, %p34_p13  ;;  %s358_s8 = sshll.u32 %s149_s6, 4 }
  0x17   : > { %s158_s11 = scalar_lea.hbm %s750_s0, %s372_s7  ;;  %s153_s20 = scalar_lea.vmem [#allocation2], %s358_s8 }
  0x18   : > { %s159_s17 = sshll.u32 %s158_s11, 4  ;;  %s161_s21 = sshll.u32 %s153_s20, 4  ;;  %s160_s17 = int_to_ptr.hbm [resolvable:$true] %s159_s17  ;;  %s162_s21 = int_to_ptr.vmem [resolvable:$true] %s161_s21 }
  0x19   : > { %p678_p9 = pnand %p401_p5, %p36_p7  ;;  %s150_s24 = scalar_lea.sflag [#allocation3], %s149_s6 }
  0x1a   : > { %s472_s25 = sshra.s32 %s160_s17, 4  ;;  %s479_s8 = scalar_lea.hbm %s750_s0, 32  ;;  %s473_s25 = int_to_ptr.hbm [resolvable:$true] %s472_s25 }
  0x1b   : > { %s474_s29 = scalar_lea.hbm %s473_s25, 16  ;;  %p476_p10 = pneg %p678_p9 }
  0x1c   : > { %p475_p2 = scmp.ne.s32.totalorder %s473_s25, %s474_s29  ;;  %p480_p0 = scmp.lt.s32.totalorder %s473_s25, %s750_s0 }
  0x1d   : > { %p481_p5 = scmp.lt.s32.totalorder %s479_s8, %s474_s29 }
  0x1e   : > { %p477_p12 = pnand %p476_p10, %p475_p2 }
  0x1f   : > { %p482_p7 = por %p481_p5, %p480_p0 }
  0x20   : > { %p478_p13 = pneg %p477_p12 }
  0x22   : > { %p483_p11 = pnand %p482_p7, %p478_p13 }
  0x24   : > { %486 = shalt.err (!%p483_p11)
}
  0x25   : > { %395 = dma.hbm_to_vmem [thread:$0]  (!%p678_p9), %s160_s17, 256, %s162_s21, %s150_s24, %s575_s27, %s575_s27, %s576_s28  }
  0x26   : > { %173 = sbr.rel (%p642_p8) target bundleno = 191 (0xbf), region = 32  ;;  %s698_s6 = sand.u32 (!%p642_p8), 1, %s564_s13  }
  0x27   : > { %s362_s11 = sshll.u32 (!%p642_p8), %s698_s6, 4  ;;  %s176_s20 = scalar_lea.sflag (!%p642_p8), [#allocation3], %s698_s6 }
  0x28   : > { %s179_s25 = scalar_lea.vmem (!%p642_p8), [#allocation2], %s362_s11 }
  0x2b   : > { %547 = dma.done.wait (%p629_p4), %s176_s20, 256  }
  0x2c   : > { %549 = vsyncadd (%p629_p4), %s176_s20, 4294967040 }
  0x2d   : > { %551 = dma.done.wait (%p41_p1), [#allocation6], 768  }
  0x2e   : > { %553 = vsyncadd (%p41_p1), [#allocation6], 4294966528  ;;  %v217_v0 = vld [vmem:[#allocation5 + $0x28] sm:$0xff]  ;;  %v216_v1 = vld [vmem:[#allocation5 + $0x20] sm:$0xff]  ;;  %vm222_vm0 = vcmask 392192   ;;  %s373_s18 = sshll.u32 %s620_s16, 4 }
  0x2f   : > { %239 = vmatpush.msra.mxu0 %v217_v0  ;;  %374 = vmatpush.msra.mxu1 %v217_v0  ;;  %v215_v2 = vld [vmem:[#allocation5 + $0x18] sm:$0xff]  ;;  %v214_v3 = vld [vmem:[#allocation5 + $0x10] sm:$0xff]  ;;  %v213_v4 = vld [vmem:[#allocation5 + $0x8] sm:$0xff]  ;;  %s267_s28 = scalar_lea.hbm %s753_s3, %s373_s18  ;;  %s207_s22 = scalar_lea.vmem [#allocation7], %s362_s11  ;;  %vm252_vm1 = vcmask 785408  }
  0x30   : > { %v212_v5 = vld [vmem:[#allocation5] sm:$0xff]  ;;  %v211_v7 = vld [vmem:[%s179_s25 + $0x8] sm:$0xff]  ;;  %s268_s24 = sshll.u32 %s207_s22, 4  ;;  %s270_s29 = sshll.u32 %s267_s28, 4  ;;  %s269_s24 = int_to_ptr.vmem [resolvable:$true] %s268_s24  ;;  %s271_s29 = int_to_ptr.hbm [resolvable:$true] %s270_s29 }
  0x31   : > { %240 = vmatpush.msra.mxu0 %v216_v1  ;;  %375 = vmatpush.msra.mxu1 %v216_v1  ;;  %v210_v6 = vld [vmem:[%s179_s25] sm:$0xff]  ;;  %s256_s16 = scalar_lea.sflag [#allocation4], %s698_s6  ;;  %s516_s30 = sshra.s32 %s271_s29, 4  ;;  %s517_s30 = int_to_ptr.hbm [resolvable:$true] %s516_s30 }
  0x32   : > { %v441_v8 = vld [vmem:[%s752_s2] ss:$0 sm:$0xff]  ;;  %s518_s7 = scalar_lea.hbm %s517_s30, 16  ;;  %s522_s10 = scalar_lea.hbm %s753_s3, 32 }
  0x33   : > { %241 = vmatpush.msra.mxu0 %v215_v2  ;;  %376 = vmatpush.msra.mxu1 %v215_v2  ;;  %p519_p1 = scmp.ne.s32.totalorder %s517_s30, %s518_s7  ;;  %p523_p11 = scmp.lt.s32.totalorder %s517_s30, %s753_s3 }
  0x34   : > { %p524_p9 = scmp.lt.s32.totalorder %s522_s10, %s518_s7 }
  0x35   : > { %242 = vmatpush.msra.mxu0 %v214_v3  ;;  %377 = vmatpush.msra.mxu1 %v214_v3  ;;  %p520_p4 = pnand %p519_p1, %p668_p3 }
  0x36   : > { %p525_p2 = por %p524_p9, %p523_p11 }
  0x37   : > { %243 = vmatpush.msra.mxu0 %v213_v4  ;;  %378 = vmatpush.msra.mxu1 %v213_v4  ;;  %p521_p8 = pneg %p520_p4 }
  0x39   : > { %244 = vmatpush.msra.mxu0 %v212_v5  ;;  %379 = vmatpush.msra.mxu1 %v212_v5  ;;  %p526_p10 = pnand %p525_p2, %p521_p8 }
  0x3a   : > { %365 = vmatmul.msk.f32.vlgmr.msra.gmra.mxu0 %vm222_vm0, %v210_v6  ;;  %366 = vmatmul.msk.f32.vlgmr.msra.gmra.mxu1 %vm222_vm0, %v211_v7 }
  0xb7   : > { %v246_v9 = vpop.f32.mrf.mxu0  ;;  %v249_v10 = vpop.f32.mrf.mxu1 }
  0xb8   : > { %v247_v11 = vadd.f32 %v441_v8, %v246_v9  ;;  %v250_v12 = vadd.f32 %v441_v8, %v249_v10 }
  0xba   : > { %253 = vst.msk [vmem:[%s207_s22] sm:$0xff] %vm252_vm1, %v247_v11 }
  0xbb   : > { %254 = vst.msk [vmem:[%s207_s22 + $0x8] sm:$0xff] %vm252_vm1, %v250_v12 }
  0xbc   : > { %529 = shalt.err (!%p526_p10)
}
  0xbd   : > { %s577_s6 = smov 128   ;;  %s578_s25 = smov 8  }
  0xbe   : > { %386 = dma.vmem_to_hbm [thread:$0]  (%p668_p3), %s269_s24, 256, %s271_s29, %s256_s16, %s577_s6, %s577_s6, %s578_s25  }
  0xbf PF: > { %s285_s18 = sand.u32 1, %s560_s12   ;;  %p759_p12 = scmp.ge.s32.totalorder %s572_s15, 2 }
  0xc0   : > { %s286_s23 = scalar_lea.sflag [#allocation4], %s285_s18 }
  0xc1   : > { %p397_p13 = pnand %p759_p12, %p634_p6 }
  0xc3   : > { %p398_p0 = pneg %p397_p13 }
  0xc5   : > { %555 = dma.done.wait (%p398_p0), %s286_s23, 256  }
  0xc6   : > { %557 = vsyncadd (%p398_p0), %s286_s23, 4294967040  ;;  %p17_p5 = scmp.ge.s32.totalorder %s652_s26, 4   ;;  %s760_s12 = smov %s564_s13 }
  0xc7   : > { %s761_s13 = smov %s568_s14  ;;  %s762_s14 = smov %s664_s4 }
  0xc8   : > { %s763_s15 = smov %s652_s26  ;;  %19 = sbr.rel (!%p17_p5) target bundleno = 6 (0x6), region = 81 }
  0xcd   :  { %292 = vsyncpa [#allocation3], 1 }
  0xce   :  { %294 = vsyncpa [#allocation3 + $0x1], 1 }
  0xcf   :  { %295 = vsyncpa [#allocation6], 1 }
  0xd0   :  { %296 = vsyncpa [#allocation4], 1 }
  0xd1   :  { %298 = vsyncpa [#allocation4 + $0x1], 1 }

</bundles_post_ra>
